<compile_context>
chip_gen: v6e
topology: v6e:2x2x1
jax: 0.10.0
libtpu: 0.0.40
codegen_flags: <defaults>
</compile_context>

<pallas_src>
import jax
import jax.numpy as jnp
from jax.experimental import pallas as pl
from jax.experimental.pallas import tpu as pltpu


def _sigmoid(z):
    # exp goes to the EUP slot; keep the reciprocal exact to match the reference tightly.
    return pl.reciprocal(1.0 + jnp.exp(-z), approx=False)


def circlenet_kernel(x_ref, w1c0_ref, w1c1_ref, b1_ref, w2c_ref, b2_ref, o_ref):
    # Shapes (per grid step):
    #   x_ref    : (2, TB)   -- batch on lanes
    #   w1c0_ref : (6, 1)    -- column 0 of W1 (hidden x in)
    #   w1c1_ref : (6, 1)    -- column 1 of W1
    #   b1_ref   : (6, 1)
    #   w2c_ref  : (6, 1)    -- W2 as a column (hidden -> out)
    #   b2_ref   : (1, 1)
    #   o_ref    : (1, TB)
    x0 = x_ref[0:1, :]                      # (1, TB)
    x1 = x_ref[1:2, :]                      # (1, TB)

    # Layer 1: VPU broadcast multiply-adds over the K=2 contraction, hidden on sublanes.
    h = w1c0_ref[...] * x0 + w1c1_ref[...] * x1 + b1_ref[...]   # (6, TB)
    h = _sigmoid(h)

    # Layer 2: elementwise scale by W2 column + sublane reduce (K=6 contraction).
    y = jnp.sum(w2c_ref[...] * h, axis=0, keepdims=True) + b2_ref[...]   # (1, TB)
    o_ref[...] = _sigmoid(y).astype(o_ref.dtype)


def circlenet_forward(x, w1, b1, w2, b2, *, max_lane_tile=2048):
    """x: (B, 2) f32. Params in PyTorch nn.Linear layout: w1 (6,2), b1 (6,), w2 (1,6), b2 (1,)."""
    B = x.shape[0]
    # Lane tile: power of two, >= 128 (lane width), capped so double-buffered tiles stay tiny
    # even on v7x's 64 MiB VMEM.
    tb = max(128, min(max_lane_tile, pl.next_power_of_2(B)))
    b_pad = pl.cdiv(B, tb) * tb

    # Layout plumbing in the wrapper (pure data movement, fused by XLA):
    xT = jnp.zeros((2, b_pad), jnp.float32).at[:, :B].set(x.T.astype(jnp.float32))
    w1c0 = w1[:, 0:1].astype(jnp.float32)          # (6, 1)
    w1c1 = w1[:, 1:2].astype(jnp.float32)          # (6, 1)
    b1c = b1.reshape(6, 1).astype(jnp.float32)     # (6, 1)
    w2c = w2.reshape(1, 6).T.astype(jnp.float32)   # (6, 1)
    b2c = b2.reshape(1, 1).astype(jnp.float32)     # (1, 1)

    grid = (b_pad // tb,)
    yT = pl.pallas_call(
        circlenet_kernel,
        out_shape=jax.ShapeDtypeStruct((1, b_pad), jnp.float32),
        grid_spec=pltpu.PrefetchScalarGridSpec(
            num_scalar_prefetch=0,
            grid=grid,
            in_specs=[
                pl.BlockSpec((2, tb), lambda i: (0, i)),   # x: tiled over batch lanes
                pl.BlockSpec((6, 1), lambda i: (0, 0)),    # params: resident across the grid
                pl.BlockSpec((6, 1), lambda i: (0, 0)),
                pl.BlockSpec((6, 1), lambda i: (0, 0)),
                pl.BlockSpec((6, 1), lambda i: (0, 0)),
                pl.BlockSpec((1, 1), lambda i: (0, 0)),
            ],
            out_specs=pl.BlockSpec((1, tb), lambda i: (0, i)),
        ),
        compiler_params=pltpu.CompilerParams(
            dimension_semantics=("parallel",),
        ),
    )(xT, w1c0, w1c1, b1c, w2c, b2c)

    return yT[0, :B].reshape(B, 1)


def init_params():
    # Deterministic init mimicking nn.Linear's U(-1/sqrt(fan_in), 1/sqrt(fan_in)),
    # stored in PyTorch layout: weight (out_features, in_features), bias (out_features,).
    key = jax.random.PRNGKey(42)
    k1, k2, k3, k4 = jax.random.split(key, 4)
    bound1 = 1.0 / jnp.sqrt(2.0)   # layer1: in_features = 2
    bound2 = 1.0 / jnp.sqrt(6.0)   # layer2: in_features = 6
    w1 = jax.random.uniform(k1, (6, 2), jnp.float32, -bound1, bound1)
    b1 = jax.random.uniform(k2, (6,), jnp.float32, -bound1, bound1)
    w2 = jax.random.uniform(k3, (1, 6), jnp.float32, -bound2, bound2)
    b2 = jax.random.uniform(k4, (1,), jnp.float32, -bound2, bound2)
    return w1, b1, w2, b2


def reference_forward(x, w1, b1, w2, b2):
    def sig(z):
        return 1.0 / (1.0 + jnp.exp(-z))
    h = sig(x @ w1.T + b1)
    return sig(h @ w2.T + b2)


if __name__ == "__main__":
    key = jax.random.PRNGKey(0)
    B = 8
    x = jax.random.normal(key, (B, 2), jnp.float32)
    w1, b1, w2, b2 = init_params()

    out = circlenet_forward(x, w1, b1, w2, b2)
    out = jax.block_until_ready(out)

    ref = reference_forward(x, w1, b1, w2, b2)
    assert out.shape == (B, 1)
    assert jnp.allclose(out, ref, atol=1e-5, rtol=1e-5)
    print("KERNEL_OK")
</pallas_src>

<mosaic_0001>
module attributes {stable_mosaic.version = 11 : i64} {
  func.func @circlenet_kernel(%arg0: i32, %arg1: memref<2x128xf32, #tpu.memory_space<vmem>>, %arg2: memref<6x1xf32, #tpu.memory_space<vmem>>, %arg3: memref<6x1xf32, #tpu.memory_space<vmem>>, %arg4: memref<6x1xf32, #tpu.memory_space<vmem>>, %arg5: memref<6x1xf32, #tpu.memory_space<vmem>>, %arg6: memref<1x1xf32, #tpu.memory_space<vmem>>, %arg7: memref<1x128xf32, #tpu.memory_space<vmem>>) attributes {dimension_semantics = [#tpu.dimension_semantics<parallel>], iteration_bounds = array<i64: 1>, scalar_prefetch = 0 : i64, scratch_operands = 0 : i64, tpu.core_type = #tpu.core_type<tc>, window_params = [{transform_indices = @transform_0, window_bounds = array<i64: 2, 128>}, {pipeline_mode = #tpu.pipeline_mode<synchronous>, transform_indices = @transform_1, window_bounds = array<i64: 6, 1>}, {pipeline_mode = #tpu.pipeline_mode<synchronous>, transform_indices = @transform_2, window_bounds = array<i64: 6, 1>}, {pipeline_mode = #tpu.pipeline_mode<synchronous>, transform_indices = @transform_3, window_bounds = array<i64: 6, 1>}, {pipeline_mode = #tpu.pipeline_mode<synchronous>, transform_indices = @transform_4, window_bounds = array<i64: 6, 1>}, {pipeline_mode = #tpu.pipeline_mode<synchronous>, transform_indices = @transform_5, window_bounds = array<i64: 1, 1>}, {transform_indices = @transform_6, window_bounds = array<i64: 1, 128>}]} {
    %c0 = arith.constant 0 : index
    %c0_0 = arith.constant 0 : index
    %0 = vector.load %arg1[%c0, %c0_0] : memref<2x128xf32, #tpu.memory_space<vmem>>, vector<1x128xf32>
    %c1 = arith.constant 1 : index
    %c0_1 = arith.constant 0 : index
    %1 = vector.load %arg1[%c1, %c0_1] : memref<2x128xf32, #tpu.memory_space<vmem>>, vector<1x128xf32>
    %c0_2 = arith.constant 0 : index
    %c0_3 = arith.constant 0 : index
    %2 = vector.load %arg2[%c0_2, %c0_3] : memref<6x1xf32, #tpu.memory_space<vmem>>, vector<6x1xf32>
    %3 = vector.broadcast %2 : vector<6x1xf32> to vector<6x128xf32>
    %4 = vector.broadcast %0 : vector<1x128xf32> to vector<6x128xf32>
    %5 = arith.mulf %3, %4 : vector<6x128xf32>
    %c0_4 = arith.constant 0 : index
    %c0_5 = arith.constant 0 : index
    %6 = vector.load %arg3[%c0_4, %c0_5] : memref<6x1xf32, #tpu.memory_space<vmem>>, vector<6x1xf32>
    %7 = vector.broadcast %6 : vector<6x1xf32> to vector<6x128xf32>
    %8 = vector.broadcast %1 : vector<1x128xf32> to vector<6x128xf32>
    %9 = arith.mulf %7, %8 : vector<6x128xf32>
    %10 = arith.addf %5, %9 : vector<6x128xf32>
    %c0_6 = arith.constant 0 : index
    %c0_7 = arith.constant 0 : index
    %11 = vector.load %arg4[%c0_6, %c0_7] : memref<6x1xf32, #tpu.memory_space<vmem>>, vector<6x1xf32>
    %12 = vector.broadcast %11 : vector<6x1xf32> to vector<6x128xf32>
    %13 = arith.addf %10, %12 : vector<6x128xf32>
    %cst = arith.constant 0.000000e+00 : f32
    %14 = vector.broadcast %cst : f32 to vector<6x128xf32>
    %15 = arith.subf %14, %13 : vector<6x128xf32>
    %16 = math.exp %15 : vector<6x128xf32>
    %cst_8 = arith.constant 1.000000e+00 : f32
    %17 = vector.broadcast %cst_8 : f32 to vector<6x128xf32>
    %18 = arith.addf %17, %16 : vector<6x128xf32>
    %19 = tpu.reciprocal %18 : vector<6x128xf32> -> vector<6x128xf32>
    %c0_9 = arith.constant 0 : index
    %c0_10 = arith.constant 0 : index
    %20 = vector.load %arg5[%c0_9, %c0_10] : memref<6x1xf32, #tpu.memory_space<vmem>>, vector<6x1xf32>
    %21 = vector.broadcast %20 : vector<6x1xf32> to vector<6x128xf32>
    %22 = arith.mulf %21, %19 : vector<6x128xf32>
    %cst_11 = arith.constant dense<0.000000e+00> : vector<128xf32>
    %23 = vector.multi_reduction <add>, %22, %cst_11 [0] : vector<6x128xf32> to vector<128xf32>
    %24 = vector.shape_cast %23 : vector<128xf32> to vector<1x128xf32>
    %c0_12 = arith.constant 0 : index
    %c0_13 = arith.constant 0 : index
    %25 = vector.load %arg6[%c0_12, %c0_13] : memref<1x1xf32, #tpu.memory_space<vmem>>, vector<1x1xf32>
    %26 = vector.broadcast %25 : vector<1x1xf32> to vector<1x128xf32>
    %27 = arith.addf %24, %26 : vector<1x128xf32>
    %cst_14 = arith.constant 0.000000e+00 : f32
    %28 = vector.broadcast %cst_14 : f32 to vector<1x128xf32>
    %29 = arith.subf %28, %27 : vector<1x128xf32>
    %30 = math.exp %29 : vector<1x128xf32>
    %cst_15 = arith.constant 1.000000e+00 : f32
    %31 = vector.broadcast %cst_15 : f32 to vector<1x128xf32>
    %32 = arith.addf %31, %30 : vector<1x128xf32>
    %33 = tpu.reciprocal %32 : vector<1x128xf32> -> vector<1x128xf32>
    %c0_16 = arith.constant 0 : index
    %c0_17 = arith.constant 0 : index
    %34 = vector.load %arg7[%c0_16, %c0_17] : memref<1x128xf32, #tpu.memory_space<vmem>>, vector<1x128xf32>
    tpu.vector_store %arg7[%c0_16, %c0_17], %33 {strides = array<i32>} : memref<1x128xf32, #tpu.memory_space<vmem>>, vector<1x128xf32>,
    return
  }
  func.func @transform_0(%arg0: i32) -> (i32, i32) {
    %c0_i32 = arith.constant 0 : i32
    %c0_i32_0 = arith.constant 0 : i32
    return %c0_i32, %arg0 : i32, i32
  }
  func.func @transform_1(%arg0: i32) -> (i32, i32) {
    %c0_i32 = arith.constant 0 : i32
    %c0_i32_0 = arith.constant 0 : i32
    %c0_i32_1 = arith.constant 0 : i32
    return %c0_i32, %c0_i32_0 : i32, i32
  }
  func.func @transform_2(%arg0: i32) -> (i32, i32) {
    %c0_i32 = arith.constant 0 : i32
    %c0_i32_0 = arith.constant 0 : i32
    %c0_i32_1 = arith.constant 0 : i32
    return %c0_i32, %c0_i32_0 : i32, i32
  }
  func.func @transform_3(%arg0: i32) -> (i32, i32) {
    %c0_i32 = arith.constant 0 : i32
    %c0_i32_0 = arith.constant 0 : i32
    %c0_i32_1 = arith.constant 0 : i32
    return %c0_i32, %c0_i32_0 : i32, i32
  }
  func.func @transform_4(%arg0: i32) -> (i32, i32) {
    %c0_i32 = arith.constant 0 : i32
    %c0_i32_0 = arith.constant 0 : i32
    %c0_i32_1 = arith.constant 0 : i32
    return %c0_i32, %c0_i32_0 : i32, i32
  }
  func.func @transform_5(%arg0: i32) -> (i32, i32) {
    %c0_i32 = arith.constant 0 : i32
    %c0_i32_0 = arith.constant 0 : i32
    %c0_i32_1 = arith.constant 0 : i32
    return %c0_i32, %c0_i32_0 : i32, i32
  }
  func.func @transform_6(%arg0: i32) -> (i32, i32) {
    %c0_i32 = arith.constant 0 : i32
    %c0_i32_0 = arith.constant 0 : i32
    return %c0_i32, %arg0 : i32, i32
  }
}

</mosaic_0001>

<bundles_post_ra>
// kernel: tpu_custom_call.1
= control target key start
LH: loop header
LB: loop body
LE: loop exit
PB: predicated region body
PF: predicated region fallthrough
CT: control target
= control target key end

     0   :  { %s206_s0 = inlined_call_operand.vmem [shape: f32[2,128], index: 0, kind: input, shape index: {}]   ;;  %s207_s1 = inlined_call_operand.vmem [shape: f32[6,1], index: 1, kind: input, shape index: {}]   ;;  %s208_s2 = inlined_call_operand.vmem [shape: f32[6,1], index: 2, kind: input, shape index: {}]   ;;  %s209_s3 = inlined_call_operand.vmem [shape: f32[6,1], index: 3, kind: input, shape index: {}]   ;;  %s210_s4 = inlined_call_operand.vmem [shape: f32[6,1], index: 4, kind: input, shape index: {}]   ;;  %s211_s5 = inlined_call_operand.<no memory space> [shape: f32[1,1], index: 5, kind: input, shape index: {}]   ;;  %s212_s6 = inlined_call_operand.hbm [shape: f32[1,128], index: 6, kind: output, shape index: {}]  }
   0x1   :  { %v11_v0 = vstv %s211_s5 }
   0x2   :  { %12 = vst [vmem:[#allocation2] sm:$0x1] %v11_v0 }
   0x3   :  { %v28_v1 = vld [vmem:[%s207_s1] sm:$0x3f]  ;;  %v145_v3 = vmov 0  }
   0x4   :  { %v51_v2 = vld [vmem:[%s209_s3] sm:$0x3f]  ;;  %113 = vset.pattern.permute.xlu0 %v145_v3  ;;  %114 = vset.pattern.permute.xlu1 %v145_v3 }
   0x5   :  { %31 = vperm.xlu0 %113, %v28_v1   ;;  %54 = vperm.xlu1 %114, %v51_v2   ;;  %v39_v4 = vld [vmem:[%s208_s2] sm:$0x3f] }
   0x6   :  { %v63_v5 = vld [vmem:[%s210_s4] sm:$0x3f] }
   0x7   :  { %13 = vsyncpa [#allocation4], 0  ;;  %v109_v8 = vld [vmem:[%s206_s0] ss:$0 sm:$0xff]  ;;  %v110_v9 = vld [vmem:[%s206_s0 + $0x1] ss:$0 sm:$0xff]  ;;  %v84_v23 = vlaneseq }
   0x8   :  { %vm70_vm0 = vcmask 1045504   ;;  %s146_s0 = smov [#allocation3]  }
   0x9   :  { %42 = vperm.xlu0 %113, %v39_v4   ;;  %66 = vperm.xlu1 %114, %v63_v5   ;;  %v78_v6 = vld [vmem:[#allocation2] sm:$0x1]  ;;  %v85_v27 = vshrl.u32 %v84_v23, 7  ;;  %s101_s2 = sshll.u32 %s146_s0, 4  ;;  %s102_s2 = int_to_ptr.vmem [resolvable:$true] %s101_s2 }
   0xa   :  { %s123_s4 = scalar_lea.vmem %s102_s2, 16  ;;  %s127_s8 = scalar_lea.vmem %s102_s2, 32 }
   0xb   :  { %v86_v30 = vsub.s32 0, %v85_v27  ;;  %p124_p0 = scmp.ne.s32.totalorder %s102_s2, %s123_s4  ;;  %p128_p1 = scmp.lt.s32.totalorder %s102_s2, %s102_s2 }
   0xc   :  { %p129_p2 = scmp.lt.s32.totalorder %s127_s8, %s123_s4 }
   0xd   :  { %81 = vperm.xlu0 %113, %v78_v6  }
   0xe   :  { %p130_p3 = por %p129_p2, %p128_p1 }
  0x10   :  { %p131_p4 = pnand %p130_p3, %p124_p0 }
  0x80   :  { %v32_v7 = vpop.permute.xlu0 %31  ;;  %v55_v14 = vpop.permute.xlu1 %54 }
  0x81   :  { %v38_v11 = vmul.f32 %v109_v8, %v32_v7 }
  0x84   :  { %v43_v10 = vpop.permute.xlu0 %42  ;;  %v67_v21 = vpop.permute.xlu1 %66 }
  0x85   :  { %v49_v12 = vmul.f32 %v110_v9, %v43_v10 }
  0x87   :  { %v50_v13 = vadd.f32 %v49_v12, %v38_v11 }
  0x88   :  { %v82_v31 = vpop.permute.xlu0 %81 }
  0x89   :  { %v57_v15 = vadd.f32 %v55_v14, %v50_v13  ;;  %v87_v34 = vrot.slane %v82_v31, %v86_v30 }
  0x8b   :  { %v58_v16 = vsub.f32 0.0, %v57_v15 }
  0x8d   :  { %v59_v17 = vmul.f32 1.442695, %v58_v16 }
  0x8f   :  { %115 = vpow2.f32 %v59_v17 }
  0x9c   :  { %v116_v18 = vpop.eup %115 }
  0x9d   :  { %v61_v19 = vadd.f32 1.0, %v116_v18 }
  0x9f   :  { %117 = vrcp.f32 %v61_v19 }
  0xac   :  { %v118_v20 = vpop.eup %117 }
  0xad   :  { %v69_v22 = vmul.f32 %v118_v20, %v67_v21 }
  0xaf   :  { %v71_v24 = vsel %vm70_vm0, %v69_v22, 0.0 }
  0xb0   :  { %v72_v25 = vrot.slane %v71_v24, 4 }
  0xb2   :  { %v73_v26 = vadd.f32 %v72_v25, %v71_v24 }
  0xb4   :  { %v74_v28 = vrot.slane %v73_v26, 2 }
  0xb6   :  { %v75_v29 = vadd.f32 %v74_v28, %v73_v26 }
  0xb8   :  { %v76_v32 = vrot.slane %v75_v29, 1 }
  0xba   :  { %v77_v33 = vadd.f32 %v76_v32, %v75_v29 }
  0xbc   :  { %v88_v35 = vadd.f32 %v87_v34, %v77_v33 }
  0xbe   :  { %v89_v36 = vsub.f32 0.0, %v88_v35 }
  0xc0   :  { %v90_v37 = vmul.f32 1.442695, %v89_v36 }
  0xc2   :  { %119 = vpow2.f32 %v90_v37 }
  0xcf   :  { %v120_v38 = vpop.eup %119 }
  0xd0   :  { %v92_v39 = vadd.f32 1.0, %v120_v38 }
  0xd2   :  { %121 = vrcp.f32 %v92_v39 }
  0xdf   :  { %v122_v40 = vpop.eup %121 }
  0xe0   :  { %94 = vst [vmem:[#allocation3] sm:$0x1] %v122_v40 }
  0xe1   :  { %134 = shalt.err (!%p131_p4)
}
  0xe2   :  { %104 = dma.vmem_to_hbm [thread:$0]  %s102_s2, 16, %s212_s6, [#allocation4]  }
  0xe3   :  { %143 = dma.done.wait [#allocation4], 16  }
  0xe4   :  { %144 = vsyncadd [#allocation4], 4294967280 }
  0xe5   :  { %108 = vsyncpa [#allocation4], 1 }

</bundles_post_ra>
